<compile_context>
chip_gen: v5e
topology: v5e:2x2
jax: 0.10.0
libtpu: 0.0.40
codegen_flags: <defaults>
</compile_context>

<pallas_src>
import jax
import jax.numpy as jnp
from jax.experimental import pallas as pl
from jax.experimental.pallas import tpu as pltpu

LANE = 128     # feature dims zero-padded to a multiple of this (lane-dense)
SUBLANE = 8    # batch padded to a multiple of this (sublane)


def _round_up(x, m):
    return (x + m - 1) // m * m


# --------------------------------------------------------------------------
# Kernel: the whole MLP in one body. refs = (x, w0, b0, ..., w_{L-1}, b_{L-1}, out)
# --------------------------------------------------------------------------
def _make_mlp_kernel(n_layers):
    def kernel(*refs):
        x_ref = refs[0]
        wb_refs = refs[1:1 + 2 * n_layers]
        out_ref = refs[1 + 2 * n_layers]

        h = x_ref[...]
        for i in range(n_layers):
            w = wb_refs[2 * i][...]
            b = wb_refs[2 * i + 1][...]          # (1, d_out) f32 bias row
            # MXU matmul with f32 accumulation; bias add / ReLU stay in f32
            # on the VPU (works on v5e: no bf16-VPU dependence).
            acc = jnp.dot(h.astype(w.dtype), w,
                          preferred_element_type=jnp.float32)
            acc = acc + b
            if i < n_layers - 1:
                # ReLU; the activation stays live and feeds the next matmul
                # directly (no store-then-reload round trip through VMEM).
                h = jnp.maximum(acc, 0.0)
            else:
                out_ref[...] = acc.astype(out_ref.dtype)

    return kernel


# --------------------------------------------------------------------------
# Parameter init (matches torch.nn.Linear default U(-1/sqrt(in), 1/sqrt(in)))
# --------------------------------------------------------------------------
def init_neunet_params(key, input_size, output_size, hidden_sizes):
    """Weights stored as (in_features, out_features) so y = x @ W + b."""
    sizes = [input_size] + list(hidden_sizes) + [output_size]
    params = []
    for i in range(len(sizes) - 1):
        d_in, d_out = sizes[i], sizes[i + 1]
        key, kw, kb = jax.random.split(key, 3)
        bound = 1.0 / jnp.sqrt(jnp.float32(d_in))
        w = jax.random.uniform(kw, (d_in, d_out), jnp.float32, -bound, bound)
        b = jax.random.uniform(kb, (d_out,), jnp.float32, -bound, bound)
        params.append((w, b))
    return params


def prepare_params(params, param_dtype=jnp.float32):
    """One-time prep (hoisted out of forward): pad every feature dim to a
    multiple of 128; bias stored as a (1, d_out_pad) f32 row.
    Zero padding is mathematically exact (0 rows/cols/bias propagate as 0).
    Note (v6e/v7x): if you control layer widths, picking multiples of 256
    fills the 2x256^2 MXU better; padding here stays at 128."""
    dims = [params[0][0].shape[0]] + [w.shape[1] for w, _ in params]
    dims_pad = [_round_up(d, LANE) for d in dims]
    padded = []
    for i, (w, b) in enumerate(params):
        d_in, d_out = w.shape
        d_in_p, d_out_p = dims_pad[i], dims_pad[i + 1]
        w_p = jnp.zeros((d_in_p, d_out_p), param_dtype)
        w_p = w_p.at[:d_in, :d_out].set(w.astype(param_dtype))
        b_p = jnp.zeros((1, d_out_p), jnp.float32)
        b_p = b_p.at[:, :d_out].set(b.astype(jnp.float32)[None, :])
        padded.append((w_p, b_p))
    return padded, dims, dims_pad


def _resident_spec(shape, single_buffer):
    """BlockSpec for a grid-invariant operand (weight/bias). Requests a single
    pipeline buffer when the jax version supports pipeline_mode; otherwise the
    default (double-buffered) spec is used. Returns (spec, buffer_count)."""
    idx = lambda i: (0, 0)
    if single_buffer and hasattr(pl, "Buffered"):
        try:
            return pl.BlockSpec(shape, idx, pipeline_mode=pl.Buffered(1)), 1
        except Exception:
            pass
    return pl.BlockSpec(shape, idx), 2


# --------------------------------------------------------------------------
# Forward-pass factory
# --------------------------------------------------------------------------
def make_neunet_forward(params, *, block_batch=512,
                        param_dtype=jnp.float32,   # bf16 recommended on v6e/v7x
                        act_dtype=jnp.float32,
                        out_dtype=jnp.float32,
                        single_buffer_weights=True):
    padded_params, dims, dims_pad = prepare_params(params, param_dtype)
    n_layers = len(padded_params)
    d_in, d_out = dims[0], dims[-1]
    d_in_p, d_out_p = dims_pad[0], dims_pad[-1]
    kernel = _make_mlp_kernel(n_layers)

    w_isz = jnp.dtype(param_dtype).itemsize
    a_isz = jnp.dtype(act_dtype).itemsize
    o_isz = jnp.dtype(out_dtype).itemsize

    # Grid-invariant weight / bias BlockSpecs (single-buffered when supported).
    wb_specs = []
    weight_bufs = 1
    for dinp, doutp in zip(dims_pad[:-1], dims_pad[1:]):
        w_spec, nb_w = _resident_spec((dinp, doutp), single_buffer_weights)
        b_spec, nb_b = _resident_spec((1, doutp), single_buffer_weights)
        weight_bufs = max(weight_bufs, nb_w, nb_b)
        wb_specs += [w_spec, b_spec]

    weight_bytes = sum(dinp * doutp * w_isz + doutp * 4
                       for dinp, doutp in zip(dims_pad[:-1], dims_pad[1:]))

    # Generation-aware VMEM budget: ~3/4 of physical VMEM
    # (~48 MiB on v7x's 64 MiB, ~96 MiB on v5e/v6e's 128 MiB).
    try:
        phys_vmem = int(pltpu.get_tpu_info().vmem_capacity_bytes)
    except Exception:
        phys_vmem = 64 << 20          # conservative fallback (v7x-sized)
    vmem_cap = (phys_vmem * 3) // 4

    max_hidden = max(dims_pad[1:-1]) if n_layers > 1 else 0

    def est_vmem(tb):
        est = 2 * tb * d_in_p * a_isz        # input tile (double-buffered)
        est += 2 * tb * d_out_p * o_isz      # output tile (double-buffered)
        est += weight_bufs * weight_bytes    # resident weights + biases
        est += 2 * tb * max_hidden * 4       # live f32 hidden activations
        return est

    def forward(x):
        batch = x.shape[0]
        batch_su = _round_up(batch, SUBLANE)

        # Batch tile: aim for >=2 grid tiles (v7x megacore) when batch allows,
        # capped at block_batch; shrink further if the VMEM estimate is too big.
        tb = min(block_batch,
                 max(SUBLANE, _round_up(-(-batch_su // 2), SUBLANE)))
        while tb > SUBLANE and est_vmem(tb) > vmem_cap:
            tb = max(SUBLANE, _round_up(tb // 2, SUBLANE))
        # TODO(synk): if the weights alone exceed vmem_cap (very wide layers),
        # stream weight K-tiles from HBM with pltpu.emit_pipeline instead.

        batch_p = _round_up(batch_su, tb)
        grid = (batch_p // tb,)
        vmem_limit = int(min(vmem_cap, max(est_vmem(tb) + (2 << 20), 8 << 20)))

        # Pad once with jnp.pad (fusable by XLA) — no full zeros() materialize.
        x_p = jnp.pad(x.astype(act_dtype),
                      ((0, batch_p - batch), (0, d_in_p - d_in)))

        flops = 2 * batch_p * sum(dinp * doutp for dinp, doutp
                                  in zip(dims_pad[:-1], dims_pad[1:]))
        bytes_accessed = (batch_p * d_in_p * a_isz
                          + batch_p * d_out_p * o_isz + weight_bytes)
        cost = pl.CostEstimate(flops=int(flops), transcendentals=0,
                               bytes_accessed=int(bytes_accessed))

        flat_inputs = [x_p]
        for w_p, b_p in padded_params:
            flat_inputs += [w_p, b_p]

        out_p = pl.pallas_call(
            kernel,
            out_shape=jax.ShapeDtypeStruct((batch_p, d_out_p), out_dtype),
            grid=grid,
            in_specs=[pl.BlockSpec((tb, d_in_p), lambda i: (i, 0))] + wb_specs,
            out_specs=pl.BlockSpec((tb, d_out_p), lambda i: (i, 0)),
            compiler_params=pltpu.CompilerParams(
                dimension_semantics=("parallel",),   # shard batch tiles (v7x)
                vmem_limit_bytes=vmem_limit,
            ),
            cost_estimate=cost,
        )(*flat_inputs)

        return out_p[:batch, :d_out]

    return jax.jit(forward)


if __name__ == "__main__":
    # Small shapes consistent with the module's forward: x is (batch, input_size).
    batch = 8
    input_size = 32
    hidden_sizes = [64, 32]
    output_size = 16

    key = jax.random.PRNGKey(0)
    key, kx = jax.random.split(key)
    x = jax.random.normal(kx, (batch, input_size), jnp.float32)

    params = init_neunet_params(key, input_size, output_size, hidden_sizes)

    # TODO(synk): the module's `activation` ctor arg is generic; ReLU assumed.
    try:
        forward = make_neunet_forward(params)     # param_dtype=jnp.bfloat16 for big MLPs
        out = jax.block_until_ready(forward(x))
    except Exception:
        # Fallback for jax builds that reject pipeline_mode=pl.Buffered(1) on
        # top-level pallas_call BlockSpecs: use default (double) buffering.
        forward = make_neunet_forward(params, single_buffer_weights=False)
        out = jax.block_until_ready(forward(x))

    # Pure-JAX reference of the same math.
    ref = x
    for i, (w, b) in enumerate(params):
        ref = ref @ w + b
        if i < len(params) - 1:
            ref = jnp.maximum(ref, 0.0)

    assert out.shape == (batch, output_size)
    assert jnp.allclose(out, ref, atol=1e-5, rtol=1e-5)

    print("KERNEL_OK")
</pallas_src>

<mosaic_0001>
module attributes {stable_mosaic.version = 11 : i64} {
  func.func @kernel(%arg0: i32, %arg1: memref<8x128xf32, #tpu.memory_space<vmem>>, %arg2: memref<128x128xf32, #tpu.memory_space<vmem>>, %arg3: memref<1x128xf32, #tpu.memory_space<vmem>>, %arg4: memref<128x128xf32, #tpu.memory_space<vmem>>, %arg5: memref<1x128xf32, #tpu.memory_space<vmem>>, %arg6: memref<128x128xf32, #tpu.memory_space<vmem>>, %arg7: memref<1x128xf32, #tpu.memory_space<vmem>>, %arg8: memref<8x128xf32, #tpu.memory_space<vmem>>) attributes {dimension_semantics = [#tpu.dimension_semantics<parallel>], iteration_bounds = array<i64: 1>, scalar_prefetch = 0 : i64, scratch_operands = 0 : i64, tpu.core_type = #tpu.core_type<tc>, window_params = [{transform_indices = @transform_0, window_bounds = array<i64: 8, 128>}, {pipeline_mode = #tpu.pipeline_mode<synchronous>, transform_indices = @transform_1, window_bounds = array<i64: 128, 128>}, {pipeline_mode = #tpu.pipeline_mode<synchronous>, transform_indices = @transform_2, window_bounds = array<i64: 1, 128>}, {pipeline_mode = #tpu.pipeline_mode<synchronous>, transform_indices = @transform_3, window_bounds = array<i64: 128, 128>}, {pipeline_mode = #tpu.pipeline_mode<synchronous>, transform_indices = @transform_4, window_bounds = array<i64: 1, 128>}, {pipeline_mode = #tpu.pipeline_mode<synchronous>, transform_indices = @transform_5, window_bounds = array<i64: 128, 128>}, {pipeline_mode = #tpu.pipeline_mode<synchronous>, transform_indices = @transform_6, window_bounds = array<i64: 1, 128>}, {transform_indices = @transform_7, window_bounds = array<i64: 8, 128>}]} {
    %c0 = arith.constant 0 : index
    %c0_0 = arith.constant 0 : index
    %0 = vector.load %arg1[%c0, %c0_0] : memref<8x128xf32, #tpu.memory_space<vmem>>, vector<8x128xf32>
    %c0_1 = arith.constant 0 : index
    %c0_2 = arith.constant 0 : index
    %1 = vector.load %arg2[%c0_1, %c0_2] : memref<128x128xf32, #tpu.memory_space<vmem>>, vector<128x128xf32>
    %c0_3 = arith.constant 0 : index
    %c0_4 = arith.constant 0 : index
    %2 = vector.load %arg3[%c0_3, %c0_4] : memref<1x128xf32, #tpu.memory_space<vmem>>, vector<1x128xf32>
    %cst = arith.constant dense<0.000000e+00> : vector<8x128xf32>
    %3 = tpu.matmul %0, %1, %cst {dimension_numbers = #tpu.dot_dimension_numbers<[1], [0], [0], [1], [0, 0, 1, 1], [], []>} : vector<8x128xf32>, vector<128x128xf32>, vector<8x128xf32> -> vector<8x128xf32>
    %4 = vector.broadcast %2 : vector<1x128xf32> to vector<8x128xf32>
    %5 = arith.addf %3, %4 : vector<8x128xf32>
    %cst_5 = arith.constant 0.000000e+00 : f32
    %6 = vector.broadcast %cst_5 : f32 to vector<8x128xf32>
    %7 = arith.maximumf %5, %6 : vector<8x128xf32>
    %c0_6 = arith.constant 0 : index
    %c0_7 = arith.constant 0 : index
    %8 = vector.load %arg4[%c0_6, %c0_7] : memref<128x128xf32, #tpu.memory_space<vmem>>, vector<128x128xf32>
    %c0_8 = arith.constant 0 : index
    %c0_9 = arith.constant 0 : index
    %9 = vector.load %arg5[%c0_8, %c0_9] : memref<1x128xf32, #tpu.memory_space<vmem>>, vector<1x128xf32>
    %cst_10 = arith.constant dense<0.000000e+00> : vector<8x128xf32>
    %10 = tpu.matmul %7, %8, %cst_10 {dimension_numbers = #tpu.dot_dimension_numbers<[1], [0], [0], [1], [0, 0, 1, 1], [], []>} : vector<8x128xf32>, vector<128x128xf32>, vector<8x128xf32> -> vector<8x128xf32>
    %11 = vector.broadcast %9 : vector<1x128xf32> to vector<8x128xf32>
    %12 = arith.addf %10, %11 : vector<8x128xf32>
    %cst_11 = arith.constant 0.000000e+00 : f32
    %13 = vector.broadcast %cst_11 : f32 to vector<8x128xf32>
    %14 = arith.maximumf %12, %13 : vector<8x128xf32>
    %c0_12 = arith.constant 0 : index
    %c0_13 = arith.constant 0 : index
    %15 = vector.load %arg6[%c0_12, %c0_13] : memref<128x128xf32, #tpu.memory_space<vmem>>, vector<128x128xf32>
    %c0_14 = arith.constant 0 : index
    %c0_15 = arith.constant 0 : index
    %16 = vector.load %arg7[%c0_14, %c0_15] : memref<1x128xf32, #tpu.memory_space<vmem>>, vector<1x128xf32>
    %cst_16 = arith.constant dense<0.000000e+00> : vector<8x128xf32>
    %17 = tpu.matmul %14, %15, %cst_16 {dimension_numbers = #tpu.dot_dimension_numbers<[1], [0], [0], [1], [0, 0, 1, 1], [], []>} : vector<8x128xf32>, vector<128x128xf32>, vector<8x128xf32> -> vector<8x128xf32>
    %18 = vector.broadcast %16 : vector<1x128xf32> to vector<8x128xf32>
    %19 = arith.addf %17, %18 : vector<8x128xf32>
    %c0_17 = arith.constant 0 : index
    %c0_18 = arith.constant 0 : index
    %20 = vector.load %arg8[%c0_17, %c0_18] : memref<8x128xf32, #tpu.memory_space<vmem>>, vector<8x128xf32>
    tpu.vector_store %arg8[%c0_17, %c0_18], %19 {strides = array<i32>} : memref<8x128xf32, #tpu.memory_space<vmem>>, vector<8x128xf32>,
    return
  }
  func.func @transform_0(%arg0: i32) -> (i32, i32) {
    %c0_i32 = arith.constant 0 : i32
    %c0_i32_0 = arith.constant 0 : i32
    return %arg0, %c0_i32 : i32, i32
  }
  func.func @transform_1(%arg0: i32) -> (i32, i32) {
    %c0_i32 = arith.constant 0 : i32
    %c0_i32_0 = arith.constant 0 : i32
    %c0_i32_1 = arith.constant 0 : i32
    return %c0_i32, %c0_i32_0 : i32, i32
  }
  func.func @transform_2(%arg0: i32) -> (i32, i32) {
    %c0_i32 = arith.constant 0 : i32
    %c0_i32_0 = arith.constant 0 : i32
    %c0_i32_1 = arith.constant 0 : i32
    return %c0_i32, %c0_i32_0 : i32, i32
  }
  func.func @transform_3(%arg0: i32) -> (i32, i32) {
    %c0_i32 = arith.constant 0 : i32
    %c0_i32_0 = arith.constant 0 : i32
    %c0_i32_1 = arith.constant 0 : i32
    return %c0_i32, %c0_i32_0 : i32, i32
  }
  func.func @transform_4(%arg0: i32) -> (i32, i32) {
    %c0_i32 = arith.constant 0 : i32
    %c0_i32_0 = arith.constant 0 : i32
    %c0_i32_1 = arith.constant 0 : i32
    return %c0_i32, %c0_i32_0 : i32, i32
  }
  func.func @transform_5(%arg0: i32) -> (i32, i32) {
    %c0_i32 = arith.constant 0 : i32
    %c0_i32_0 = arith.constant 0 : i32
    %c0_i32_1 = arith.constant 0 : i32
    return %c0_i32, %c0_i32_0 : i32, i32
  }
  func.func @transform_6(%arg0: i32) -> (i32, i32) {
    %c0_i32 = arith.constant 0 : i32
    %c0_i32_0 = arith.constant 0 : i32
    %c0_i32_1 = arith.constant 0 : i32
    return %c0_i32, %c0_i32_0 : i32, i32
  }
  func.func @transform_7(%arg0: i32) -> (i32, i32) {
    %c0_i32 = arith.constant 0 : i32
    %c0_i32_0 = arith.constant 0 : i32
    return %arg0, %c0_i32 : i32, i32
  }
}

module attributes {stable_mosaic.version = 11 : i64} {
  func.func @kernel(%arg0: i32, %arg1: memref<8x128xf32, #tpu.memory_space<vmem>>, %arg2: memref<128x128xf32, #tpu.memory_space<vmem>>, %arg3: memref<1x128xf32, #tpu.memory_space<vmem>>, %arg4: memref<128x128xf32, #tpu.memory_space<vmem>>, %arg5: memref<1x128xf32, #tpu.memory_space<vmem>>, %arg6: memref<128x128xf32, #tpu.memory_space<vmem>>, %arg7: memref<1x128xf32, #tpu.memory_space<vmem>>, %arg8: memref<8x128xf32, #tpu.memory_space<vmem>>) attributes {dimension_semantics = [#tpu.dimension_semantics<parallel>], iteration_bounds = array<i64: 1>, scalar_prefetch = 0 : i64, scratch_operands = 0 : i64, tpu.core_type = #tpu.core_type<tc>, window_params = [{transform_indices = @transform_0, window_bounds = array<i64: 8, 128>}, {pipeline_mode = #tpu.pipeline_mode<synchronous>, transform_indices = @transform_1, window_bounds = array<i64: 128, 128>}, {pipeline_mode = #tpu.pipeline_mode<synchronous>, transform_indices = @transform_2, window_bounds = array<i64: 1, 128>}, {pipeline_mode = #tpu.pipeline_mode<synchronous>, transform_indices = @transform_3, window_bounds = array<i64: 128, 128>}, {pipeline_mode = #tpu.pipeline_mode<synchronous>, transform_indices = @transform_4, window_bounds = array<i64: 1, 128>}, {pipeline_mode = #tpu.pipeline_mode<synchronous>, transform_indices = @transform_5, window_bounds = array<i64: 128, 128>}, {pipeline_mode = #tpu.pipeline_mode<synchronous>, transform_indices = @transform_6, window_bounds = array<i64: 1, 128>}, {transform_indices = @transform_7, window_bounds = array<i64: 8, 128>}]} {
    %c0 = arith.constant 0 : index
    %c0_0 = arith.constant 0 : index
    %0 = vector.load %arg1[%c0, %c0_0] : memref<8x128xf32, #tpu.memory_space<vmem>>, vector<8x128xf32>
    %c0_1 = arith.constant 0 : index
    %c0_2 = arith.constant 0 : index
    %1 = vector.load %arg2[%c0_1, %c0_2] : memref<128x128xf32, #tpu.memory_space<vmem>>, vector<128x128xf32>
    %c0_3 = arith.constant 0 : index
    %c0_4 = arith.constant 0 : index
    %2 = vector.load %arg3[%c0_3, %c0_4] : memref<1x128xf32, #tpu.memory_space<vmem>>, vector<1x128xf32>
    %cst = arith.constant dense<0.000000e+00> : vector<8x128xf32>
    %3 = tpu.matmul %0, %1, %cst {dimension_numbers = #tpu.dot_dimension_numbers<[1], [0], [0], [1], [0, 0, 1, 1], [], []>} : vector<8x128xf32>, vector<128x128xf32>, vector<8x128xf32> -> vector<8x128xf32>
    %4 = vector.broadcast %2 : vector<1x128xf32> to vector<8x128xf32>
    %5 = arith.addf %3, %4 : vector<8x128xf32>
    %cst_5 = arith.constant 0.000000e+00 : f32
    %6 = vector.broadcast %cst_5 : f32 to vector<8x128xf32>
    %7 = arith.maximumf %5, %6 : vector<8x128xf32>
    %c0_6 = arith.constant 0 : index
    %c0_7 = arith.constant 0 : index
    %8 = vector.load %arg4[%c0_6, %c0_7] : memref<128x128xf32, #tpu.memory_space<vmem>>, vector<128x128xf32>
    %c0_8 = arith.constant 0 : index
    %c0_9 = arith.constant 0 : index
    %9 = vector.load %arg5[%c0_8, %c0_9] : memref<1x128xf32, #tpu.memory_space<vmem>>, vector<1x128xf32>
    %cst_10 = arith.constant dense<0.000000e+00> : vector<8x128xf32>
    %10 = tpu.matmul %7, %8, %cst_10 {dimension_numbers = #tpu.dot_dimension_numbers<[1], [0], [0], [1], [0, 0, 1, 1], [], []>} : vector<8x128xf32>, vector<128x128xf32>, vector<8x128xf32> -> vector<8x128xf32>
    %11 = vector.broadcast %9 : vector<1x128xf32> to vector<8x128xf32>
    %12 = arith.addf %10, %11 : vector<8x128xf32>
    %cst_11 = arith.constant 0.000000e+00 : f32
    %13 = vector.broadcast %cst_11 : f32 to vector<8x128xf32>
    %14 = arith.maximumf %12, %13 : vector<8x128xf32>
    %c0_12 = arith.constant 0 : index
    %c0_13 = arith.constant 0 : index
    %15 = vector.load %arg6[%c0_12, %c0_13] : memref<128x128xf32, #tpu.memory_space<vmem>>, vector<128x128xf32>
    %c0_14 = arith.constant 0 : index
    %c0_15 = arith.constant 0 : index
    %16 = vector.load %arg7[%c0_14, %c0_15] : memref<1x128xf32, #tpu.memory_space<vmem>>, vector<1x128xf32>
    %cst_16 = arith.constant dense<0.000000e+00> : vector<8x128xf32>
    %17 = tpu.matmul %14, %15, %cst_16 {dimension_numbers = #tpu.dot_dimension_numbers<[1], [0], [0], [1], [0, 0, 1, 1], [], []>} : vector<8x128xf32>, vector<128x128xf32>, vector<8x128xf32> -> vector<8x128xf32>
    %18 = vector.broadcast %16 : vector<1x128xf32> to vector<8x128xf32>
    %19 = arith.addf %17, %18 : vector<8x128xf32>
    %c0_17 = arith.constant 0 : index
    %c0_18 = arith.constant 0 : index
    %20 = vector.load %arg8[%c0_17, %c0_18] : memref<8x128xf32, #tpu.memory_space<vmem>>, vector<8x128xf32>
    tpu.vector_store %arg8[%c0_17, %c0_18], %19 {strides = array<i32>} : memref<8x128xf32, #tpu.memory_space<vmem>>, vector<8x128xf32>,
    return
  }
  func.func @transform_0(%arg0: i32) -> (i32, i32) {
    %c0_i32 = arith.constant 0 : i32
    %c0_i32_0 = arith.constant 0 : i32
    return %arg0, %c0_i32 : i32, i32
  }
  func.func @transform_1(%arg0: i32) -> (i32, i32) {
    %c0_i32 = arith.constant 0 : i32
    %c0_i32_0 = arith.constant 0 : i32
    %c0_i32_1 = arith.constant 0 : i32
    return %c0_i32, %c0_i32_0 : i32, i32
  }
  func.func @transform_2(%arg0: i32) -> (i32, i32) {
    %c0_i32 = arith.constant 0 : i32
    %c0_i32_0 = arith.constant 0 : i32
    %c0_i32_1 = arith.constant 0 : i32
    return %c0_i32, %c0_i32_0 : i32, i32
  }
  func.func @transform_3(%arg0: i32) -> (i32, i32) {
    %c0_i32 = arith.constant 0 : i32
    %c0_i32_0 = arith.constant 0 : i32
    %c0_i32_1 = arith.constant 0 : i32
    return %c0_i32, %c0_i32_0 : i32, i32
  }
  func.func @transform_4(%arg0: i32) -> (i32, i32) {
    %c0_i32 = arith.constant 0 : i32
    %c0_i32_0 = arith.constant 0 : i32
    %c0_i32_1 = arith.constant 0 : i32
    return %c0_i32, %c0_i32_0 : i32, i32
  }
  func.func @transform_5(%arg0: i32) -> (i32, i32) {
    %c0_i32 = arith.constant 0 : i32
    %c0_i32_0 = arith.constant 0 : i32
    %c0_i32_1 = arith.constant 0 : i32
    return %c0_i32, %c0_i32_0 : i32, i32
  }
  func.func @transform_6(%arg0: i32) -> (i32, i32) {
    %c0_i32 = arith.constant 0 : i32
    %c0_i32_0 = arith.constant 0 : i32
    %c0_i32_1 = arith.constant 0 : i32
    return %c0_i32, %c0_i32_0 : i32, i32
  }
  func.func @transform_7(%arg0: i32) -> (i32, i32) {
    %c0_i32 = arith.constant 0 : i32
    %c0_i32_0 = arith.constant 0 : i32
    return %arg0, %c0_i32 : i32, i32
  }
}

</mosaic_0001>

<bundles_post_ra>
// kernel: forward.1
= control target key start
LH: loop header
LB: loop body
LE: loop exit
PB: predicated region body
PF: predicated region fallthrough
CT: control target
= control target key end

     0   :  { %12 = vsyncpa [#allocation3], 0  ;;  %s397_s0 = inlined_call_operand.vmem [shape: f32[8,128], index: 0, kind: input, shape index: {}]   ;;  %s398_s1 = inlined_call_operand.hbm [shape: f32[128,128], index: 1, kind: input, shape index: {}]   ;;  %s399_s2 = inlined_call_operand.vmem [shape: f32[1,128], index: 2, kind: input, shape index: {}]   ;;  %s400_s3 = inlined_call_operand.hbm [shape: f32[128,128], index: 3, kind: input, shape index: {}]   ;;  %s401_s4 = inlined_call_operand.vmem [shape: f32[1,128], index: 4, kind: input, shape index: {}]   ;;  %s402_s5 = inlined_call_operand.hbm [shape: f32[128,128], index: 5, kind: input, shape index: {}]   ;;  %s403_s6 = inlined_call_operand.vmem [shape: f32[1,128], index: 6, kind: input, shape index: {}]   ;;  %s404_s7 = inlined_call_operand.hbm [shape: f32[8,128], index: 7, kind: output, shape index: {}]  }
   0x1   :  { %13 = vsyncpa [#allocation6], 0 }
   0x2   :  { %14 = vsyncpa [#allocation4], 0  ;;  %s36_s26 = sshll.u32 %s400_s3, 4  ;;  %s327_s27 = smov [#allocation5]   ;;  %s37_s26 = int_to_ptr.hbm [resolvable:$true] %s36_s26 }
   0x3   :  { %s38_s28 = sshll.u32 %s327_s27, 4  ;;  %s21_s8 = sshll.u32 %s398_s1, 4  ;;  %s39_s28 = int_to_ptr.vmem [resolvable:$true] %s38_s28  ;;  %s22_s8 = int_to_ptr.hbm [resolvable:$true] %s21_s8 }
   0x4   :  { %s328_s9 = smov 128   ;;  %s329_s10 = smov 8  }
   0x5   :  { %44 = dma.hbm_to_vmem [thread:$0]  %s37_s26, 2048, %s39_s28, [#allocation6], %s328_s9, %s328_s9, %s329_s10  }
   0x6   :  { %s330_s11 = smov [#allocation2]   ;;  %s51_s15 = sshll.u32 %s402_s5, 4  ;;  %s52_s15 = int_to_ptr.hbm [resolvable:$true] %s51_s15 }
   0x7   :  { %s23_s12 = sshll.u32 %s330_s11, 4  ;;  %s331_s3 = smov [#allocation7]   ;;  %s24_s12 = int_to_ptr.vmem [resolvable:$true] %s23_s12 }
   0x8   :  { %29 = dma.hbm_to_vmem [thread:$0]  %s22_s8, 2048, %s24_s12, [#allocation3], %s328_s9, %s328_s9, %s329_s10  }
   0x9   :  { %s53_s16 = sshll.u32 %s331_s3, 4  ;;  %s54_s16 = int_to_ptr.vmem [resolvable:$true] %s53_s16 }
   0xa   :  { %59 = dma.hbm_to_vmem [thread:$0]  %s52_s15, 2048, %s54_s16, [#allocation6], %s328_s9, %s328_s9, %s329_s10  }
   0xb   :  { %321 = dma.done.wait [#allocation3], 2048  }
   0xc   :  { %322 = vsyncadd [#allocation3], 4294965248 }
   0xd   :  { %323 = dma.done.wait [#allocation6], 4096  }
   0xe   :  { %324 = vsyncadd [#allocation6], 4294963200  ;;  %v90_v0 = vld [vmem:[#allocation2 + $0x78] sm:$0xff]  ;;  %v89_v1 = vld [vmem:[#allocation2 + $0x70] sm:$0xff]  ;;  %s332_s21 = smov [#allocation8]   ;;  %s205_s25 = sshll.u32 %s404_s7, 4  ;;  %s206_s25 = int_to_ptr.hbm [resolvable:$true] %s205_s25 }
   0xf   :  { %95 = vmatpush.msra.mxu0 %v90_v0  ;;  %v88_v2 = vld [vmem:[#allocation2 + $0x68] sm:$0xff]  ;;  %v87_v3 = vld [vmem:[#allocation2 + $0x60] sm:$0xff]  ;;  %v131_v4 = vld [vmem:[#allocation5 + $0x78] sm:$0xff]  ;;  %s203_s22 = sshll.u32 %s332_s21, 4  ;;  %s204_s22 = int_to_ptr.vmem [resolvable:$true] %s203_s22 }
  0x10   :  { %v86_v5 = vld [vmem:[#allocation2 + $0x58] sm:$0xff]  ;;  %136 = vmatpush.msra.mxu1 %v131_v4  ;;  %v130_v6 = vld [vmem:[#allocation5 + $0x70] sm:$0xff]  ;;  %v129_v7 = vld [vmem:[#allocation5 + $0x68] sm:$0xff] }
  0x11   :  { %96 = vmatpush.msra.mxu0 %v89_v1  ;;  %v85_v8 = vld [vmem:[#allocation2 + $0x50] sm:$0xff]  ;;  %v128_v9 = vld [vmem:[#allocation5 + $0x60] sm:$0xff]  ;;  %v84_v10 = vld [vmem:[#allocation2 + $0x48] sm:$0xff] }
  0x12   :  { %137 = vmatpush.msra.mxu1 %v130_v6  ;;  %v127_v11 = vld [vmem:[#allocation5 + $0x58] sm:$0xff]  ;;  %v83_v12 = vld [vmem:[#allocation2 + $0x40] sm:$0xff]  ;;  %v126_v13 = vld [vmem:[#allocation5 + $0x50] sm:$0xff] }
  0x13   :  { %97 = vmatpush.msra.mxu0 %v88_v2  ;;  %v82_v14 = vld [vmem:[#allocation2 + $0x38] sm:$0xff]  ;;  %v125_v15 = vld [vmem:[#allocation5 + $0x48] sm:$0xff]  ;;  %v81_v16 = vld [vmem:[#allocation2 + $0x30] sm:$0xff] }
  0x14   :  { %138 = vmatpush.msra.mxu1 %v129_v7  ;;  %v124_v17 = vld [vmem:[#allocation5 + $0x40] sm:$0xff]  ;;  %v80_v18 = vld [vmem:[#allocation2 + $0x28] sm:$0xff]  ;;  %v123_v19 = vld [vmem:[#allocation5 + $0x38] sm:$0xff] }
  0x15   :  { %98 = vmatpush.msra.mxu0 %v87_v3  ;;  %v79_v20 = vld [vmem:[#allocation2 + $0x20] sm:$0xff]  ;;  %v122_v21 = vld [vmem:[#allocation5 + $0x30] sm:$0xff]  ;;  %v78_v22 = vld [vmem:[#allocation2 + $0x18] sm:$0xff] }
  0x16   :  { %139 = vmatpush.msra.mxu1 %v128_v9  ;;  %v121_v23 = vld [vmem:[#allocation5 + $0x28] sm:$0xff]  ;;  %v77_v24 = vld [vmem:[#allocation2 + $0x10] sm:$0xff]  ;;  %v120_v25 = vld [vmem:[#allocation5 + $0x20] sm:$0xff] }
  0x17   :  { %99 = vmatpush.msra.mxu0 %v86_v5  ;;  %v76_v26 = vld [vmem:[#allocation2 + $0x8] sm:$0xff]  ;;  %v119_v27 = vld [vmem:[#allocation5 + $0x18] sm:$0xff]  ;;  %v75_v28 = vld [vmem:[#allocation2] sm:$0xff] }
  0x18   :  { %140 = vmatpush.msra.mxu1 %v127_v11  ;;  %v74_v29 = vld [vmem:[%s397_s0] sm:$0xff]  ;;  %v118_v30 = vld [vmem:[#allocation5 + $0x10] sm:$0xff]  ;;  %v117_v31 = vld [vmem:[#allocation5 + $0x8] sm:$0xff] }
  0x19   :  { %100 = vmatpush.msra.mxu0 %v85_v8  ;;  %v116_v32 = vld [vmem:[#allocation5] sm:$0xff]  ;;  %v172_v33 = vld [vmem:[#allocation7 + $0x78] sm:$0xff]  ;;  %v171_v34 = vld [vmem:[#allocation7 + $0x70] sm:$0xff] }
  0x1a   :  { %141 = vmatpush.msra.mxu1 %v126_v13  ;;  %177 = vmatpush.msra.mxu2 %v172_v33  ;;  %v170_v35 = vld [vmem:[#allocation7 + $0x68] sm:$0xff]  ;;  %v169_v36 = vld [vmem:[#allocation7 + $0x60] sm:$0xff]  ;;  %v168_v37 = vld [vmem:[#allocation7 + $0x58] sm:$0xff] }
  0x1b   :  { %101 = vmatpush.msra.mxu0 %v84_v10  ;;  %v167_v38 = vld [vmem:[#allocation7 + $0x50] sm:$0xff]  ;;  %v166_v39 = vld [vmem:[#allocation7 + $0x48] sm:$0xff]  ;;  %v165_v40 = vld [vmem:[#allocation7 + $0x40] sm:$0xff] }
  0x1c   :  { %142 = vmatpush.msra.mxu1 %v125_v15  ;;  %178 = vmatpush.msra.mxu2 %v171_v34  ;;  %v164_v41 = vld [vmem:[#allocation7 + $0x38] sm:$0xff]  ;;  %v163_v42 = vld [vmem:[#allocation7 + $0x30] sm:$0xff]  ;;  %v162_v43 = vld [vmem:[#allocation7 + $0x28] sm:$0xff] }
  0x1d   :  { %102 = vmatpush.msra.mxu0 %v83_v12  ;;  %v161_v44 = vld [vmem:[#allocation7 + $0x20] sm:$0xff]  ;;  %v160_v45 = vld [vmem:[#allocation7 + $0x18] sm:$0xff]  ;;  %v159_v50 = vld [vmem:[#allocation7 + $0x10] sm:$0xff] }
  0x1e   :  { %143 = vmatpush.msra.mxu1 %v124_v17  ;;  %179 = vmatpush.msra.mxu2 %v170_v35  ;;  %v222_v46 = vld [vmem:[%s399_s2] ss:$0 sm:$0xff]  ;;  %v158_v51 = vld [vmem:[#allocation7 + $0x8] sm:$0xff] }
  0x1f   :  { %103 = vmatpush.msra.mxu0 %v82_v14  ;;  %v157_v52 = vld [vmem:[#allocation7] sm:$0xff] }
  0x20   :  { %144 = vmatpush.msra.mxu1 %v123_v19  ;;  %180 = vmatpush.msra.mxu2 %v169_v36  ;;  %v223_v53 = vld [vmem:[%s401_s4] ss:$0 sm:$0xff] }
  0x21   :  { %104 = vmatpush.msra.mxu0 %v81_v16  ;;  %v224_v57 = vld [vmem:[%s403_s6] ss:$0 sm:$0xff] }
  0x22   :  { %145 = vmatpush.msra.mxu1 %v122_v21  ;;  %181 = vmatpush.msra.mxu2 %v168_v37 }
  0x23   :  { %105 = vmatpush.msra.mxu0 %v80_v18 }
  0x24   :  { %146 = vmatpush.msra.mxu1 %v121_v23  ;;  %182 = vmatpush.msra.mxu2 %v167_v38 }
  0x25   :  { %106 = vmatpush.msra.mxu0 %v79_v20 }
  0x26   :  { %147 = vmatpush.msra.mxu1 %v120_v25  ;;  %183 = vmatpush.msra.mxu2 %v166_v39 }
  0x27   :  { %107 = vmatpush.msra.mxu0 %v78_v22 }
  0x28   :  { %148 = vmatpush.msra.mxu1 %v119_v27  ;;  %184 = vmatpush.msra.mxu2 %v165_v40 }
  0x29   :  { %108 = vmatpush.msra.mxu0 %v77_v24 }
  0x2a   :  { %149 = vmatpush.msra.mxu1 %v118_v30  ;;  %185 = vmatpush.msra.mxu2 %v164_v41 }
  0x2b   :  { %109 = vmatpush.msra.mxu0 %v76_v26 }
  0x2c   :  { %150 = vmatpush.msra.mxu1 %v117_v31  ;;  %186 = vmatpush.msra.mxu2 %v163_v42 }
  0x2d   :  { %110 = vmatpush.msra.mxu0 %v75_v28 }
  0x2e   :  { %111 = vmatmul.f32.vlgmr.msra.gmra.mxu0 %v74_v29  ;;  %151 = vmatpush.msra.mxu1 %v116_v32 }
  0x2f   :  { %187 = vmatpush.msra.mxu2 %v162_v43 }
  0x31   :  { %188 = vmatpush.msra.mxu2 %v161_v44 }
  0x33   :  { %189 = vmatpush.msra.mxu2 %v160_v45 }
  0x35   :  { %190 = vmatpush.msra.mxu2 %v159_v50 }
  0x37   :  { %191 = vmatpush.msra.mxu2 %v158_v51 }
  0x39   :  { %192 = vmatpush.msra.mxu2 %v157_v52 }
  0xab   :  { %v112_v47 = vpop.f32.mrf.mxu0 }
  0xac   :  { %v113_v48 = vadd.f32 %v222_v46, %v112_v47 }
  0xae   :  { %v115_v49 = vmax.f32 %v113_v48, 0.0 }
  0xb0   :  { %152 = vmatmul.f32.vlgmr.msra.gmra.mxu1 %v115_v49 }
 0x12d   :  { %v153_v54 = vpop.f32.mrf.mxu1 }
 0x12e   :  { %v154_v55 = vadd.f32 %v223_v53, %v153_v54 }
 0x130   :  { %v156_v56 = vmax.f32 %v154_v55, 0.0 }
 0x132   :  { %193 = vmatmul.f32.vlgmr.msra.gmra.mxu2 %v156_v56 }
 0x1b5   :  { %v194_v58 = vpop.f32.mrf.mxu2 }
 0x1b6   :  { %v195_v59 = vadd.f32 %v224_v57, %v194_v58 }
 0x1b8   :  { %197 = vst [vmem:[#allocation8] sm:$0xff] %v195_v59 }
 0x1b9   :  { %208 = dma.vmem_to_hbm [thread:$0]  %s204_s22, 128, %s206_s25, [#allocation4]  }
 0x1ba   :  { %325 = dma.done.wait [#allocation4], 128  }
 0x1bb   :  { %326 = vsyncadd [#allocation4], 4294967168 }
 0x1bc   :  { %213 = vsyncpa [#allocation3], 1 }
 0x1bd   :  { %214 = vsyncpa [#allocation6], 1 }
 0x1be   :  { %215 = vsyncpa [#allocation4], 1 }

// kernel: forward.1
= control target key start
LH: loop header
LB: loop body
LE: loop exit
PB: predicated region body
PF: predicated region fallthrough
CT: control target
= control target key end

     0   :  { %12 = vsyncpa [#allocation3], 0  ;;  %s397_s0 = inlined_call_operand.vmem [shape: f32[8,128], index: 0, kind: input, shape index: {}]   ;;  %s398_s1 = inlined_call_operand.hbm [shape: f32[128,128], index: 1, kind: input, shape index: {}]   ;;  %s399_s2 = inlined_call_operand.vmem [shape: f32[1,128], index: 2, kind: input, shape index: {}]   ;;  %s400_s3 = inlined_call_operand.hbm [shape: f32[128,128], index: 3, kind: input, shape index: {}]   ;;  %s401_s4 = inlined_call_operand.vmem [shape: f32[1,128], index: 4, kind: input, shape index: {}]   ;;  %s402_s5 = inlined_call_operand.hbm [shape: f32[128,128], index: 5, kind: input, shape index: {}]   ;;  %s403_s6 = inlined_call_operand.vmem [shape: f32[1,128], index: 6, kind: input, shape index: {}]   ;;  %s404_s7 = inlined_call_operand.hbm [shape: f32[8,128], index: 7, kind: output, shape index: {}]  }
   0x1   :  { %13 = vsyncpa [#allocation6], 0 }
   0x2   :  { %14 = vsyncpa [#allocation4], 0  ;;  %s36_s26 = sshll.u32 %s400_s3, 4  ;;  %s327_s27 = smov [#allocation5]   ;;  %s37_s26 = int_to_ptr.hbm [resolvable:$true] %s36_s26 }
   0x3   :  { %s38_s28 = sshll.u32 %s327_s27, 4  ;;  %s21_s8 = sshll.u32 %s398_s1, 4  ;;  %s39_s28 = int_to_ptr.vmem [resolvable:$true] %s38_s28  ;;  %s22_s8 = int_to_ptr.hbm [resolvable:$true] %s21_s8 }
   0x4   :  { %s328_s9 = smov 128   ;;  %s329_s10 = smov 8  }
   0x5   :  { %44 = dma.hbm_to_vmem [thread:$0]  %s37_s26, 2048, %s39_s28, [#allocation6], %s328_s9, %s328_s9, %s329_s10  }
   0x6   :  { %s330_s11 = smov [#allocation2]   ;;  %s51_s15 = sshll.u32 %s402_s5, 4  ;;  %s52_s15 = int_to_ptr.hbm [resolvable:$true] %s51_s15 }
   0x7   :  { %s23_s12 = sshll.u32 %s330_s11, 4  ;;  %s331_s3 = smov [#allocation7]   ;;  %s24_s12 = int_to_ptr.vmem [resolvable:$true] %s23_s12 }
   0x8   :  { %29 = dma.hbm_to_vmem [thread:$0]  %s22_s8, 2048, %s24_s12, [#allocation3], %s328_s9, %s328_s9, %s329_s10  }
   0x9   :  { %s53_s16 = sshll.u32 %s331_s3, 4  ;;  %s54_s16 = int_to_ptr.vmem [resolvable:$true] %s53_s16 }
   0xa   :  { %59 = dma.hbm_to_vmem [thread:$0]  %s52_s15, 2048, %s54_s16, [#allocation6], %s328_s9, %s328_s9, %s329_s10  }
   0xb   :  { %321 = dma.done.wait [#allocation3], 2048  }
   0xc   :  { %322 = vsyncadd [#allocation3], 4294965248 }
   0xd   :  { %323 = dma.done.wait [#allocation6], 4096  }
   0xe   :  { %324 = vsyncadd [#allocation6], 4294963200  ;;  %v90_v0 = vld [vmem:[#allocation2 + $0x78] sm:$0xff]  ;;  %v89_v1 = vld [vmem:[#allocation2 + $0x70] sm:$0xff]  ;;  %s332_s21 = smov [#allocation8]   ;;  %s205_s25 = sshll.u32 %s404_s7, 4  ;;  %s206_s25 = int_to_ptr.hbm [resolvable:$true] %s205_s25 }
   0xf   :  { %95 = vmatpush.msra.mxu0 %v90_v0  ;;  %v88_v2 = vld [vmem:[#allocation2 + $0x68] sm:$0xff]  ;;  %v87_v3 = vld [vmem:[#allocation2 + $0x60] sm:$0xff]  ;;  %v131_v4 = vld [vmem:[#allocation5 + $0x78] sm:$0xff]  ;;  %s203_s22 = sshll.u32 %s332_s21, 4  ;;  %s204_s22 = int_to_ptr.vmem [resolvable:$true] %s203_s22 }
  0x10   :  { %v86_v5 = vld [vmem:[#allocation2 + $0x58] sm:$0xff]  ;;  %136 = vmatpush.msra.mxu1 %v131_v4  ;;  %v130_v6 = vld [vmem:[#allocation5 + $0x70] sm:$0xff]  ;;  %v129_v7 = vld [vmem:[#allocation5 + $0x68] sm:$0xff] }
  0x11   :  { %96 = vmatpush.msra.mxu0 %v89_v1  ;;  %v85_v8 = vld [vmem:[#allocation2 + $0x50] sm:$0xff]  ;;  %v128_v9 = vld [vmem:[#allocation5 + $0x60] sm:$0xff]  ;;  %v84_v10 = vld [vmem:[#allocation2 + $0x48] sm:$0xff] }
  0x12   :  { %137 = vmatpush.msra.mxu1 %v130_v6  ;;  %v127_v11 = vld [vmem:[#allocation5 + $0x58] sm:$0xff]  ;;  %v83_v12 = vld [vmem:[#allocation2 + $0x40] sm:$0xff]  ;;  %v126_v13 = vld [vmem:[#allocation5 + $0x50] sm:$0xff] }
  0x13   :  { %97 = vmatpush.msra.mxu0 %v88_v2  ;;  %v82_v14 = vld [vmem:[#allocation2 + $0x38] sm:$0xff]  ;;  %v125_v15 = vld [vmem:[#allocation5 + $0x48] sm:$0xff]  ;;  %v81_v16 = vld [vmem:[#allocation2 + $0x30] sm:$0xff] }
  0x14   :  { %138 = vmatpush.msra.mxu1 %v129_v7  ;;  %v124_v17 = vld [vmem:[#allocation5 + $0x40] sm:$0xff]  ;;  %v80_v18 = vld [vmem:[#allocation2 + $0x28] sm:$0xff]  ;;  %v123_v19 = vld [vmem:[#allocation5 + $0x38] sm:$0xff] }
  0x15   :  { %98 = vmatpush.msra.mxu0 %v87_v3  ;;  %v79_v20 = vld [vmem:[#allocation2 + $0x20] sm:$0xff]  ;;  %v122_v21 = vld [vmem:[#allocation5 + $0x30] sm:$0xff]  ;;  %v78_v22 = vld [vmem:[#allocation2 + $0x18] sm:$0xff] }
  0x16   :  { %139 = vmatpush.msra.mxu1 %v128_v9  ;;  %v121_v23 = vld [vmem:[#allocation5 + $0x28] sm:$0xff]  ;;  %v77_v24 = vld [vmem:[#allocation2 + $0x10] sm:$0xff]  ;;  %v120_v25 = vld [vmem:[#allocation5 + $0x20] sm:$0xff] }
  0x17   :  { %99 = vmatpush.msra.mxu0 %v86_v5  ;;  %v76_v26 = vld [vmem:[#allocation2 + $0x8] sm:$0xff]  ;;  %v119_v27 = vld [vmem:[#allocation5 + $0x18] sm:$0xff]  ;;  %v75_v28 = vld [vmem:[#allocation2] sm:$0xff] }
  0x18   :  { %140 = vmatpush.msra.mxu1 %v127_v11  ;;  %v74_v29 = vld [vmem:[%s397_s0] sm:$0xff]  ;;  %v118_v30 = vld [vmem:[#allocation5 + $0x10] sm:$0xff]  ;;  %v117_v31 = vld [vmem:[#allocation5 + $0x8] sm:$0xff] }
  0x19   :  { %100 = vmatpush.msra.mxu0 %v85_v8  ;;  %v116_v32 = vld [vmem:[#allocation5] sm:$0xff]  ;;  %v172_v33 = vld [vmem:[#allocation7 + $0x78] sm:$0xff]  ;;  %v171_v34 = vld [vmem:[#allocation7 + $0x70] sm:$0xff] }
  0x1a   :  { %141 = vmatpush.msra.mxu1 %v126_v13  ;;  %177 = vmatpush.msra.mxu2 %v172_v33  ;;  %v170_v35 = vld [vmem:[#allocation7 + $0x68] sm:$0xff]  ;;  %v169_v36 = vld [vmem:[#allocation7 + $0x60] sm:$0xff]  ;;  %v168_v37 = vld [vmem:[#allocation7 + $0x58] sm:$0xff] }
  0x1b   :  { %101 = vmatpush.msra.mxu0 %v84_v10  ;;  %v167_v38 = vld [vmem:[#allocation7 + $0x50] sm:$0xff]  ;;  %v166_v39 = vld [vmem:[#allocation7 + $0x48] sm:$0xff]  ;;  %v165_v40 = vld [vmem:[#allocation7 + $0x40] sm:$0xff] }
  0x1c   :  { %142 = vmatpush.msra.mxu1 %v125_v15  ;;  %178 = vmatpush.msra.mxu2 %v171_v34  ;;  %v164_v41 = vld [vmem:[#allocation7 + $0x38] sm:$0xff]  ;;  %v163_v42 = vld [vmem:[#allocation7 + $0x30] sm:$0xff]  ;;  %v162_v43 = vld [vmem:[#allocation7 + $0x28] sm:$0xff] }
  0x1d   :  { %102 = vmatpush.msra.mxu0 %v83_v12  ;;  %v161_v44 = vld [vmem:[#allocation7 + $0x20] sm:$0xff]  ;;  %v160_v45 = vld [vmem:[#allocation7 + $0x18] sm:$0xff]  ;;  %v159_v50 = vld [vmem:[#allocation7 + $0x10] sm:$0xff] }
  0x1e   :  { %143 = vmatpush.msra.mxu1 %v124_v17  ;;  %179 = vmatpush.msra.mxu2 %v170_v35  ;;  %v222_v46 = vld [vmem:[%s399_s2] ss:$0 sm:$0xff]  ;;  %v158_v51 = vld [vmem:[#allocation7 + $0x8] sm:$0xff] }
  0x1f   :  { %103 = vmatpush.msra.mxu0 %v82_v14  ;;  %v157_v52 = vld [vmem:[#allocation7] sm:$0xff] }
  0x20   :  { %144 = vmatpush.msra.mxu1 %v123_v19  ;;  %180 = vmatpush.msra.mxu2 %v169_v36  ;;  %v223_v53 = vld [vmem:[%s401_s4] ss:$0 sm:$0xff] }
  0x21   :  { %104 = vmatpush.msra.mxu0 %v81_v16  ;;  %v224_v57 = vld [vmem:[%s403_s6] ss:$0 sm:$0xff] }
  0x22   :  { %145 = vmatpush.msra.mxu1 %v122_v21  ;;  %181 = vmatpush.msra.mxu2 %v168_v37 }
  0x23   :  { %105 = vmatpush.msra.mxu0 %v80_v18 }
  0x24   :  { %146 = vmatpush.msra.mxu1 %v121_v23  ;;  %182 = vmatpush.msra.mxu2 %v167_v38 }
  0x25   :  { %106 = vmatpush.msra.mxu0 %v79_v20 }
  0x26   :  { %147 = vmatpush.msra.mxu1 %v120_v25  ;;  %183 = vmatpush.msra.mxu2 %v166_v39 }
  0x27   :  { %107 = vmatpush.msra.mxu0 %v78_v22 }
  0x28   :  { %148 = vmatpush.msra.mxu1 %v119_v27  ;;  %184 = vmatpush.msra.mxu2 %v165_v40 }
  0x29   :  { %108 = vmatpush.msra.mxu0 %v77_v24 }
  0x2a   :  { %149 = vmatpush.msra.mxu1 %v118_v30  ;;  %185 = vmatpush.msra.mxu2 %v164_v41 }
  0x2b   :  { %109 = vmatpush.msra.mxu0 %v76_v26 }
  0x2c   :  { %150 = vmatpush.msra.mxu1 %v117_v31  ;;  %186 = vmatpush.msra.mxu2 %v163_v42 }
  0x2d   :  { %110 = vmatpush.msra.mxu0 %v75_v28 }
  0x2e   :  { %111 = vmatmul.f32.vlgmr.msra.gmra.mxu0 %v74_v29  ;;  %151 = vmatpush.msra.mxu1 %v116_v32 }
  0x2f   :  { %187 = vmatpush.msra.mxu2 %v162_v43 }
  0x31   :  { %188 = vmatpush.msra.mxu2 %v161_v44 }
  0x33   :  { %189 = vmatpush.msra.mxu2 %v160_v45 }
  0x35   :  { %190 = vmatpush.msra.mxu2 %v159_v50 }
  0x37   :  { %191 = vmatpush.msra.mxu2 %v158_v51 }
  0x39   :  { %192 = vmatpush.msra.mxu2 %v157_v52 }
  0xab   :  { %v112_v47 = vpop.f32.mrf.mxu0 }
  0xac   :  { %v113_v48 = vadd.f32 %v222_v46, %v112_v47 }
  0xae   :  { %v115_v49 = vmax.f32 %v113_v48, 0.0 }
  0xb0   :  { %152 = vmatmul.f32.vlgmr.msra.gmra.mxu1 %v115_v49 }
 0x12d   :  { %v153_v54 = vpop.f32.mrf.mxu1 }
 0x12e   :  { %v154_v55 = vadd.f32 %v223_v53, %v153_v54 }
 0x130   :  { %v156_v56 = vmax.f32 %v154_v55, 0.0 }
 0x132   :  { %193 = vmatmul.f32.vlgmr.msra.gmra.mxu2 %v156_v56 }
 0x1b5   :  { %v194_v58 = vpop.f32.mrf.mxu2 }
 0x1b6   :  { %v195_v59 = vadd.f32 %v224_v57, %v194_v58 }
 0x1b8   :  { %197 = vst [vmem:[#allocation8] sm:$0xff] %v195_v59 }
 0x1b9   :  { %208 = dma.vmem_to_hbm [thread:$0]  %s204_s22, 128, %s206_s25, [#allocation4]  }
 0x1ba   :  { %325 = dma.done.wait [#allocation4], 128  }
 0x1bb   :  { %326 = vsyncadd [#allocation4], 4294967168 }
 0x1bc   :  { %213 = vsyncpa [#allocation3], 1 }
 0x1bd   :  { %214 = vsyncpa [#allocation6], 1 }
 0x1be   :  { %215 = vsyncpa [#allocation4], 1 }

</bundles_post_ra>
